<compile_context>
chip_gen: v6e
topology: v6e:2x2x1
jax: 0.10.0
libtpu: 0.0.40
codegen_flags: <defaults>
</compile_context>

<pallas_src>
import math

import jax
import jax.numpy as jnp
from jax.experimental import pallas as pl
from jax.experimental.pallas import tpu as pltpu

LANES = 128                            # pad tiny output-channel dim (=4) to full lane width
SUBLANES = 8                           # pad tiny graph dim (=2) to a full sublane tile
VMEM_LIMIT_BYTES = 48 * 1024 * 1024    # > 16/32 MiB scoped defaults, < v7x's 64 MiB physical


def _round_up(x, m):
    return ((x + m - 1) // m) * m


# ---------------------------------------------------------------------------
# Phase A kernel:  z1[rows] = relu(A[rows, :] @ h0 + b1) @ W2
#   grid = (row_tiles, k_tiles); K is a reduction -> f32 accumulator scratch,
#   init (bias) at k == 0, finalize (relu + @W2) at k == last.
# ---------------------------------------------------------------------------
def _conv1_kernel(a_ref, h0_ref, b1_ref, w2_ref, z1_ref, acc_ref):
    k = pl.program_id(1)

    @pl.when(k == 0)
    def _():
        acc_ref[...] = jnp.broadcast_to(b1_ref[...], acc_ref.shape)

    acc_ref[...] += jnp.dot(a_ref[...], h0_ref[...],
                            preferred_element_type=jnp.float32)

    @pl.when(k == pl.num_programs(1) - 1)
    def _():
        h1 = jnp.maximum(acc_ref[...], 0.0).astype(jnp.bfloat16)
        z1_ref[...] = jnp.dot(h1, w2_ref[...],
                              preferred_element_type=jnp.float32
                              ).astype(jnp.bfloat16)


# ---------------------------------------------------------------------------
# Phase B kernel:  h2[rows] = relu(A[rows, :] @ z1 + b2)
#                  pooled  += (P@A_hat)[:, rows] @ h2[rows]
#                  out      = pooled @ (W3 @ Wlin) + (b3 @ Wlin + blin)
#   pooled lives in a VMEM scratch that persists across the whole grid
#   (output block index is constant); finalized on the last grid step.
# ---------------------------------------------------------------------------
def _conv2_pool_lin_kernel(a_ref, z1_ref, pat_ref, b2_ref, w3f_ref, bf_ref,
                           out_ref, acc_ref, pooled_ref):
    i = pl.program_id(0)
    k = pl.program_id(1)
    last_i = pl.num_programs(0) - 1
    last_k = pl.num_programs(1) - 1

    @pl.when(jnp.logical_and(i == 0, k == 0))
    def _():
        pooled_ref[...] = jnp.zeros_like(pooled_ref)

    @pl.when(k == 0)
    def _():
        acc_ref[...] = jnp.broadcast_to(b2_ref[...], acc_ref.shape)

    acc_ref[...] += jnp.dot(a_ref[...], z1_ref[...],
                            preferred_element_type=jnp.float32)

    @pl.when(k == last_k)
    def _():
        h2 = jnp.maximum(acc_ref[...], 0.0).astype(jnp.bfloat16)
        # pooled += PA[:, rows] @ h2[rows]; PA is passed transposed ([rows, G]),
        # so contract over the row dimension of both operands (MXU, trans-LHS).
        pooled_ref[...] += jax.lax.dot_general(
            pat_ref[...], h2,
            dimension_numbers=(((0,), (0,)), ((), ())),
            preferred_element_type=jnp.float32)

    @pl.when(jnp.logical_and(i == last_i, k == last_k))
    def _():
        # TODO(synk): F.dropout(p=0.5, training=self.training) is treated as
        # inference-mode identity (no stochastic masking in the kernel).
        out_ref[...] = (jnp.dot(pooled_ref[...].astype(jnp.bfloat16),
                                w3f_ref[...],
                                preferred_element_type=jnp.float32)
                        + bf_ref[...])


# ---------------------------------------------------------------------------
# Wrapper
# ---------------------------------------------------------------------------
def gcn_forward(a_hat, pa, x, params, *, tm=256, tk=512):
    """Fused GCN forward.

    a_hat  : [N, N]  normalized dense adjacency D^-1/2 (A + I) D^-1/2
    pa     : [G, N]  pool_mat @ a_hat (built analytically from edges/degrees)
    x      : [N, 1]  node features
    params : dict of f32 weights/biases (biases 2-D, shape [1, C])
    tm, tk : A_hat row / contraction tile sizes (tm % 8 == 0, tk % 128 == 0)
    """
    assert tm % 8 == 0 and tk % 128 == 0
    n = a_hat.shape[0]
    g = pa.shape[0]
    hid = params["w2"].shape[0]
    n_out = params["wl"].shape[1]

    n_pad = _round_up(n, math.lcm(tm, tk))
    g_pad = _round_up(g, SUBLANES)
    grid = (n_pad // tm, n_pad // tk)

    # ---- algebraic folds (exact: pool rows sum to 1, conv3->pool->lin is linear) ----
    w3f = params["w3"] @ params["wl"]                            # [H, n_out]
    bfold = params["b3"] @ params["wl"] + params["bl"]           # [1, n_out]
    w3f_pad = jnp.zeros((hid, LANES), jnp.float32).at[:, :n_out].set(w3f)
    bf_pad = jnp.zeros((1, LANES), jnp.float32).at[:, :n_out].set(bfold)

    # conv1 feature construction in the wrapper (in_channels == 1): h0 = x * W1.
    h0 = x * params["w1"]                                        # [N, H] f32

    # ---- zero-padded bf16 MXU operands (f32 accumulation inside the kernels) ----
    bf16 = jnp.bfloat16
    a_p = jnp.zeros((n_pad, n_pad), bf16).at[:n, :n].set(a_hat.astype(bf16))
    h0_p = jnp.zeros((n_pad, hid), bf16).at[:n, :].set(h0.astype(bf16))
    pat_p = jnp.zeros((n_pad, g_pad), bf16).at[:n, :g].set(pa.T.astype(bf16))
    w2b = params["w2"].astype(bf16)
    w3fb = w3f_pad.astype(bf16)

    cparams_a = pltpu.CompilerParams(
        dimension_semantics=("parallel", "arbitrary"),
        vmem_limit_bytes=VMEM_LIMIT_BYTES)
    cparams_b = pltpu.CompilerParams(
        dimension_semantics=("arbitrary", "arbitrary"),
        vmem_limit_bytes=VMEM_LIMIT_BYTES)

    cost_a = pl.CostEstimate(
        flops=2 * n_pad * n_pad * hid + 2 * n_pad * hid * hid,
        transcendentals=0,
        bytes_accessed=2 * n_pad * n_pad + 4 * n_pad * hid)
    cost_b = pl.CostEstimate(
        flops=2 * n_pad * n_pad * hid + 2 * n_pad * g_pad * hid
              + 2 * g_pad * hid * LANES,
        transcendentals=0,
        bytes_accessed=2 * n_pad * n_pad + 2 * n_pad * hid + 2 * n_pad * g_pad
                       + 4 * g_pad * LANES)

    # ---- phase A: z1 = relu(A @ h0 + b1) @ W2, row tiles in parallel ----
    z1 = pl.pallas_call(
        _conv1_kernel,
        out_shape=jax.ShapeDtypeStruct((n_pad, hid), bf16),
        grid=grid,
        in_specs=[
            pl.BlockSpec((tm, tk), lambda i, k: (i, k)),         # A row/K tile
            pl.BlockSpec((tk, hid), lambda i, k: (k, 0)),        # h0 K tile
            pl.BlockSpec((1, hid), lambda i, k: (0, 0)),         # b1
            pl.BlockSpec((hid, hid), lambda i, k: (0, 0)),       # W2
        ],
        out_specs=pl.BlockSpec((tm, hid), lambda i, k: (i, 0)),
        scratch_shapes=[pltpu.VMEM((tm, hid), jnp.float32)],     # conv1 K accumulator
        compiler_params=cparams_a,
        cost_estimate=cost_a,
    )(a_p, h0_p, params["b1"], w2b)

    # ---- phase B: conv2 + folded conv3 / mean-pool / linear ----
    out_pad = pl.pallas_call(
        _conv2_pool_lin_kernel,
        out_shape=jax.ShapeDtypeStruct((g_pad, LANES), jnp.float32),
        grid=grid,
        in_specs=[
            pl.BlockSpec((tm, tk), lambda i, k: (i, k)),         # A row/K tile
            pl.BlockSpec((tk, hid), lambda i, k: (k, 0)),        # z1 K tile
            pl.BlockSpec((tm, g_pad), lambda i, k: (i, 0)),      # (P@A_hat)^T row tile
            pl.BlockSpec((1, hid), lambda i, k: (0, 0)),         # b2
            pl.BlockSpec((hid, LANES), lambda i, k: (0, 0)),     # W3' = W3 @ Wlin
            pl.BlockSpec((1, LANES), lambda i, k: (0, 0)),       # b'  = b3 @ Wlin + blin
        ],
        out_specs=pl.BlockSpec((g_pad, LANES), lambda i, k: (0, 0)),
        scratch_shapes=[pltpu.VMEM((tm, hid), jnp.float32),      # conv2 K accumulator
                        pltpu.VMEM((g_pad, hid), jnp.float32)],  # pooled accumulator
        compiler_params=cparams_b,
        cost_estimate=cost_b,
    )(a_p, z1, pat_p, params["b2"], w3fb, bf_pad)

    return out_pad[:g, :n_out]                                   # [G, 4]


# ---------------------------------------------------------------------------
# Plain-JAX glue: graph construction, analytic pooled adjacency, params, reference.
# ---------------------------------------------------------------------------
def build_normalized_adjacency(edge_index, num_nodes):
    """A_hat = D^-1/2 (A + I) D^-1/2 with A[dst, src] += 1 (PyG gcn_norm)."""
    src, dst = edge_index[0], edge_index[1]
    a = jnp.zeros((num_nodes, num_nodes), jnp.float32).at[dst, src].add(1.0)
    a = a + jnp.eye(num_nodes, dtype=jnp.float32)                # self loops
    deg = jnp.sum(a, axis=1)
    d_inv_sqrt = jnp.where(deg > 0, jax.lax.rsqrt(deg), 0.0)
    return d_inv_sqrt[:, None] * a * d_inv_sqrt[None, :], d_inv_sqrt


def build_pooled_adjacency(edge_index, batch, num_graphs, d_inv_sqrt):
    """(pool_mat @ A_hat) computed in O(E + G*N) from edges/degrees — no N^2 pass.

    column sum of A_hat: sum_m A_hat[m, n] = d_n^{-1/2} (d_n^{-1/2} + sum_{e: src=n} d_dst^{-1/2});
    all contributing rows m lie in graph batch[n] (PyG batches are block-diagonal).
    """
    src, dst = edge_index[0], edge_index[1]
    n = batch.shape[0]
    s = d_inv_sqrt + jnp.zeros((n,), jnp.float32).at[src].add(d_inv_sqrt[dst])
    colsum = d_inv_sqrt * s                                       # [N]
    onehot = (jnp.arange(num_graphs)[:, None] == batch[None, :]).astype(jnp.float32)
    counts = jnp.maximum(onehot.sum(axis=1, keepdims=True), 1.0)
    return onehot * (colsum[None, :] / counts)                    # [G, N]


def build_pool_matrix(batch, num_graphs):
    """P[g, n] = 1/count(g) if batch[n] == g else 0 (rows sum to 1). Reference only."""
    onehot = (batch[None, :] == jnp.arange(num_graphs)[:, None]).astype(jnp.float32)
    counts = jnp.maximum(onehot.sum(axis=1, keepdims=True), 1.0)
    return onehot / counts


def gcn_reference(a_hat, pool_mat, x, params):
    """Pure-JAX f32 reference of the PyTorch forward (dropout = inference identity)."""
    h = x @ params["w1"]
    h = jnp.maximum(a_hat @ h + params["b1"], 0.0)
    h = jnp.maximum(a_hat @ (h @ params["w2"]) + params["b2"], 0.0)
    h = a_hat @ (h @ params["w3"]) + params["b3"]
    pooled = pool_mat @ h
    return pooled @ params["wl"] + params["bl"]


def init_params(key, hidden):
    ks = jax.random.split(key, 8)

    def glorot(k, fan_in, fan_out):
        limit = (6.0 / (fan_in + fan_out)) ** 0.5
        return jax.random.uniform(k, (fan_in, fan_out), jnp.float32, -limit, limit)

    return {
        "w1": glorot(ks[0], 1, hidden),
        "b1": jnp.zeros((1, hidden), jnp.float32),
        "w2": glorot(ks[1], hidden, hidden),
        "b2": jnp.zeros((1, hidden), jnp.float32),
        "w3": glorot(ks[2], hidden, hidden),
        "b3": jnp.zeros((1, hidden), jnp.float32),
        # torch Linear stores [out, in]; keep the transposed [in, out] layout.
        "wl": glorot(ks[3], hidden, 4),
        "bl": jax.random.uniform(ks[4], (1, 4), jnp.float32,
                                 -(1.0 / hidden) ** 0.5, (1.0 / hidden) ** 0.5),
    }


if __name__ == "__main__":
    key = jax.random.PRNGKey(0)
    hidden_channels = 32
    nodes_per_graph = 96
    num_graphs = 2
    num_nodes = nodes_per_graph * num_graphs

    k_x, k_p = jax.random.split(key)
    x = jax.random.normal(k_x, (num_nodes, 1), jnp.float32)

    # Two ring graphs, undirected edges in both directions.
    edges = []
    for gidx in range(num_graphs):
        base = gidx * nodes_per_graph
        for i in range(nodes_per_graph):
            a, b = base + i, base + (i + 1) % nodes_per_graph
            edges.append((a, b))
            edges.append((b, a))
    edge_index = jnp.array(edges, dtype=jnp.int32).T             # [2, E]
    batch = jnp.concatenate([jnp.full((nodes_per_graph,), gidx, jnp.int32)
                             for gidx in range(num_graphs)])     # [N]

    a_hat, d_inv_sqrt = build_normalized_adjacency(edge_index, num_nodes)
    pa = build_pooled_adjacency(edge_index, batch, num_graphs, d_inv_sqrt)
    params = init_params(k_p, hidden_channels)

    # Small tiles so the demo exercises a multi-tile (rows x K) grid:
    # N=192 -> N_pad=256, grid=(4, 2).  Real workloads keep the defaults (256, 512).
    out = gcn_forward(a_hat, pa, x, params, tm=64, tk=128)
    out = jax.block_until_ready(out)

    assert out.shape == (num_graphs, 4) and out.dtype == jnp.float32
    assert bool(jnp.all(jnp.isfinite(out)))

    # f32 pure-JAX reference (loose tolerance: kernel uses bf16 MXU operands).
    ref = gcn_reference(a_hat, build_pool_matrix(batch, num_graphs), x, params)
    assert jnp.allclose(out, ref, rtol=5e-2, atol=5e-2)

    print("KERNEL_OK")
</pallas_src>

<mosaic_0001>
module attributes {stable_mosaic.version = 11 : i64} {
  func.func @_conv1_kernel(%arg0: i32, %arg1: i32, %arg2: memref<64x128xbf16, #tpu.memory_space<vmem>>, %arg3: memref<128x32xbf16, #tpu.memory_space<vmem>>, %arg4: memref<1x32xf32, #tpu.memory_space<vmem>>, %arg5: memref<32x32xbf16, #tpu.memory_space<vmem>>, %arg6: memref<64x32xbf16, #tpu.memory_space<vmem>>, %arg7: memref<64x32xf32, #tpu.memory_space<vmem>>) attributes {dimension_semantics = [#tpu.dimension_semantics<parallel>, #tpu.dimension_semantics<arbitrary>], iteration_bounds = array<i64: 4, 2>, scalar_prefetch = 0 : i64, scratch_operands = 1 : i64, tpu.core_type = #tpu.core_type<tc>, window_params = [{transform_indices = @transform_0, window_bounds = array<i64: 64, 128>}, {transform_indices = @transform_1, window_bounds = array<i64: 128, 32>}, {pipeline_mode = #tpu.pipeline_mode<synchronous>, transform_indices = @transform_2, window_bounds = array<i64: 1, 32>}, {pipeline_mode = #tpu.pipeline_mode<synchronous>, transform_indices = @transform_3, window_bounds = array<i64: 32, 32>}, {transform_indices = @transform_4, window_bounds = array<i64: 64, 32>}]} {
    %c0_i32 = arith.constant 0 : i32
    %0 = arith.cmpi eq, %arg1, %c0_i32 : i32
    %1 = arith.extui %0 : i1 to i32
    %c0_i32_0 = arith.constant 0 : i32
    %2 = arith.cmpi ne, %1, %c0_i32_0 : i32
    scf.if %2 {
      %c0_9 = arith.constant 0 : index
      %c0_10 = arith.constant 0 : index
      %12 = vector.load %arg4[%c0_9, %c0_10] : memref<1x32xf32, #tpu.memory_space<vmem>>, vector<1x32xf32>
      %13 = vector.shape_cast %12 : vector<1x32xf32> to vector<1x32xf32>
      %14 = vector.broadcast %13 : vector<1x32xf32> to vector<64x32xf32>
      %c0_11 = arith.constant 0 : index
      %c0_12 = arith.constant 0 : index
      %15 = vector.load %arg7[%c0_11, %c0_12] : memref<64x32xf32, #tpu.memory_space<vmem>>, vector<64x32xf32>
      tpu.vector_store %arg7[%c0_11, %c0_12], %14 {strides = array<i32>} : memref<64x32xf32, #tpu.memory_space<vmem>>, vector<64x32xf32>,
    } else {
    }
    %c0 = arith.constant 0 : index
    %c0_1 = arith.constant 0 : index
    %3 = vector.load %arg7[%c0, %c0_1] : memref<64x32xf32, #tpu.memory_space<vmem>>, vector<64x32xf32>
    %c0_2 = arith.constant 0 : index
    %c0_3 = arith.constant 0 : index
    %4 = vector.load %arg2[%c0_2, %c0_3] : memref<64x128xbf16, #tpu.memory_space<vmem>>, vector<64x128xbf16>
    %c0_4 = arith.constant 0 : index
    %c0_5 = arith.constant 0 : index
    %5 = vector.load %arg3[%c0_4, %c0_5] : memref<128x32xbf16, #tpu.memory_space<vmem>>, vector<128x32xbf16>
    %cst = arith.constant dense<0.000000e+00> : vector<64x32xf32>
    %6 = tpu.matmul %4, %5, %cst {dimension_numbers = #tpu.dot_dimension_numbers<[1], [0], [0], [1], [0, 0, 1, 1], [], []>} : vector<64x128xbf16>, vector<128x32xbf16>, vector<64x32xf32> -> vector<64x32xf32>
    %7 = arith.addf %3, %6 : vector<64x32xf32>
    %c0_6 = arith.constant 0 : index
    %c0_7 = arith.constant 0 : index
    %8 = vector.load %arg7[%c0_6, %c0_7] : memref<64x32xf32, #tpu.memory_space<vmem>>, vector<64x32xf32>
    tpu.vector_store %arg7[%c0_6, %c0_7], %7 {strides = array<i32>} : memref<64x32xf32, #tpu.memory_space<vmem>>, vector<64x32xf32>,
    %c1_i32 = arith.constant 1 : i32
    %9 = arith.cmpi eq, %arg1, %c1_i32 : i32
    %10 = arith.extui %9 : i1 to i32
    %c0_i32_8 = arith.constant 0 : i32
    %11 = arith.cmpi ne, %10, %c0_i32_8 : i32
    scf.if %11 {
      %c0_9 = arith.constant 0 : index
      %c0_10 = arith.constant 0 : index
      %12 = vector.load %arg7[%c0_9, %c0_10] : memref<64x32xf32, #tpu.memory_space<vmem>>, vector<64x32xf32>
      %cst_11 = arith.constant 0.000000e+00 : f32
      %13 = vector.broadcast %cst_11 : f32 to vector<64x32xf32>
      %14 = arith.maximumf %12, %13 : vector<64x32xf32>
      %15 = arith.truncf %14 : vector<64x32xf32> to vector<64x32xbf16>
      %c0_12 = arith.constant 0 : index
      %c0_13 = arith.constant 0 : index
      %16 = vector.load %arg5[%c0_12, %c0_13] : memref<32x32xbf16, #tpu.memory_space<vmem>>, vector<32x32xbf16>
      %cst_14 = arith.constant dense<0.000000e+00> : vector<64x32xf32>
      %17 = tpu.matmul %15, %16, %cst_14 {dimension_numbers = #tpu.dot_dimension_numbers<[1], [0], [0], [1], [0, 0, 1, 1], [], []>} : vector<64x32xbf16>, vector<32x32xbf16>, vector<64x32xf32> -> vector<64x32xf32>
      %18 = arith.truncf %17 : vector<64x32xf32> to vector<64x32xbf16>
      %c0_15 = arith.constant 0 : index
      %c0_16 = arith.constant 0 : index
      %19 = vector.load %arg6[%c0_15, %c0_16] : memref<64x32xbf16, #tpu.memory_space<vmem>>, vector<64x32xbf16>
      tpu.vector_store %arg6[%c0_15, %c0_16], %18 {strides = array<i32>} : memref<64x32xbf16, #tpu.memory_space<vmem>>, vector<64x32xbf16>,
    } else {
    }
    return
  }
  func.func @transform_0(%arg0: i32, %arg1: i32) -> (i32, i32) {
    %c0_i32 = arith.constant 0 : i32
    return %arg0, %arg1 : i32, i32
  }
  func.func @transform_1(%arg0: i32, %arg1: i32) -> (i32, i32) {
    %c0_i32 = arith.constant 0 : i32
    %c0_i32_0 = arith.constant 0 : i32
    return %arg1, %c0_i32 : i32, i32
  }
  func.func @transform_2(%arg0: i32, %arg1: i32) -> (i32, i32) {
    %c0_i32 = arith.constant 0 : i32
    %c0_i32_0 = arith.constant 0 : i32
    %c0_i32_1 = arith.constant 0 : i32
    return %c0_i32, %c0_i32_0 : i32, i32
  }
  func.func @transform_3(%arg0: i32, %arg1: i32) -> (i32, i32) {
    %c0_i32 = arith.constant 0 : i32
    %c0_i32_0 = arith.constant 0 : i32
    %c0_i32_1 = arith.constant 0 : i32
    return %c0_i32, %c0_i32_0 : i32, i32
  }
  func.func @transform_4(%arg0: i32, %arg1: i32) -> (i32, i32) {
    %c0_i32 = arith.constant 0 : i32
    %c0_i32_0 = arith.constant 0 : i32
    return %arg0, %c0_i32 : i32, i32
  }
}

</mosaic_0001>

<bundles_post_ra>
// kernel: tpu_custom_call.1
= control target key start
LH: loop header
LB: loop body
LE: loop exit
PB: predicated region body
PF: predicated region fallthrough
CT: control target
= control target key end

     0   :  { %9 = vsyncpa [#allocation4], 0  ;;  %s1240_s0 = inlined_call_operand.hbm [shape: bf16[256,256], index: 0, kind: input, shape index: {}]   ;;  %s1241_s1 = inlined_call_operand.vmem [shape: bf16[256,32], index: 1, kind: input, shape index: {}]   ;;  %s1242_s2 = inlined_call_operand.vmem [shape: f32[1,32], index: 2, kind: input, shape index: {}]   ;;  %s1243_s3 = inlined_call_operand.vmem [shape: bf16[32,32], index: 3, kind: input, shape index: {}]   ;;  %s1244_s4 = inlined_call_operand.vmem [shape: bf16[256,32], index: 4, kind: output, shape index: {}]  }
   0x1   :  { %11 = vsyncpa [#allocation4 + $0x1], 0  ;;  %s1057_s15 = smov 0   ;;  %s1059_s16 = smov 0  }
   0x2   :  { %s1061_s17 = smov 0   ;;  %s1063_s18 = smov 0  }
   0x3   :  { %s1065_s19 = smov 0   ;;  %s1067_s20 = smov 0  }
   0x4   :  { %s1069_s21 = smov 0   ;;  %s1071_s22 = smov 0  }
   0x5 LB: > { %s716_s23 = sadd.s32 4294967295, %s1026_s22   ;;  %s26_s24 = sadd.s32 1, %s1018_s20  ;;  %s1026_s22 = sphi %s1071_s22, %s17_s22   ;;  %s1022_s21 = sphi %s1069_s21, %s1257_s21   ;;  %s1018_s20 = sphi %s1067_s20, %s1256_s20   ;;  %s1014_s19 = sphi %s1065_s19, %s1255_s19   ;;  %s1010_s18 = sphi %s1063_s18, %s1254_s18   ;;  %s1006_s17 = sphi %s1061_s17, %s1253_s17   ;;  %s1002_s16 = sphi %s1059_s16, %s1252_s16   ;;  %s998_s15 = sphi %s1057_s15, %s1251_s15  }
   0x6   : > { %p27_p0 = scmp.ge.s32.totalorder %s26_s24, 2  ;;  %s29_s25 = sadd.s32 1, %s1022_s21 }
   0x7   : > { %s38_s26 = sadd.s32 1, %s1006_s17  ;;  %p45_p1 = scmp.ne.s32.totalorder %s1006_s17, %s1002_s16 }
   0x8   : > { %s1259_s24 = smov (%p27_p0, %s26_s24), 0  ;;  %s1261_s25 = smov (!%p27_p0, %s29_s25), %s1022_s21 }
   0x9   : > { %s34_s27 = ssub.s32 %s1018_s20, %s1259_s24  ;;  %p46_p2 = scmp.eq.s32.totalorder %s1026_s22, 0 }
   0xa   : > { %p31_p3 = scmp.ge.s32.totalorder %s1261_s25, 4  ;;  %p51_p4 = scmp.ne.s32.totalorder %s1002_s16, %s998_s15 }
   0xb   : > { %p1108_p5 = por %p46_p2, %p45_p1  ;;  %p52_p6 = scmp.eq.s32.totalorder %s716_s23, 0 }
   0xc   : > { %s1263_s25 = smov (%p31_p3, %s1261_s25), 0  ;;  %p850_p8 = scmp.lt.s32.totalorder %s1026_s22, 8 }
   0xd   : > { %1247 = sst [smem:[#allocation6_spill]] %s1263_s25  ;;  %p1114_p7 = por %p52_p6, %p51_p4 }
   0xe   : > { %s33_s30 = ssub.s32 %s1022_s21, %s1263_s25  ;;  %s175_s6 = sand.u32 1, %s1006_s17  }
   0xf   : > { %s35_s5 = sor.u32 %s34_s27, %s33_s30  ;;  %s720_s7 = sshll.u32 %s175_s6, 5 }
  0x10   : > { %p36_p9 = scmp.eq.s32.totalorder %s35_s5, 0  ;;  %s761_s8 = sshll.u32 %s1022_s21, 4 }
  0x11   : > { %s185_s10 = sadd.s32 %s1018_s20, %s761_s8  ;;  %s179_s12 = scalar_lea.vmem [#allocation3], %s720_s7 }
  0x12   : > { %s1124_s9 = scalar_select %p36_p9, %s1006_s17, %s38_s26  }
  0x13   : > { %s723_s11 = sshll.u32 %s185_s10, 6  ;;  %s188_s13 = sshll.u32 %s179_s12, 4  ;;  %s189_s13 = int_to_ptr.vmem [resolvable:$true] %s188_s13 }
  0x14   : > { %s187_s23 = scalar_lea.hbm %s1240_s0, %s723_s11  ;;  %p1134_p10 = pnand %p850_p8, %p1108_p5 }
  0x15   : > { %p724_p11 = scmp.ge.s32.totalorder %s1026_s22, 1  ;;  %s176_s27 = scalar_lea.sflag [#allocation4], %s175_s6 }
  0x16   : > { %p934_p12 = pneg %p1134_p10  ;;  %s945_s26 = scalar_lea.vmem %s189_s13, 512 }
  0x17   : > { %p946_p13 = scmp.ne.s32.totalorder %s189_s13, %s945_s26  ;;  %s1028_s30 = smov [#allocation3]  }
  0x18   : > { %s950_s5 = sshll.u32 %s1028_s30, 4  ;;  %s951_s5 = int_to_ptr.vmem [resolvable:$false] %s950_s5 }
  0x19   : > { %p948_p0 = pnand %p946_p13, %p934_p12  ;;  %s952_s7 = scalar_lea.vmem %s951_s5, 1024 }
  0x1a   : > { %p953_p2 = scmp.lt.s32.totalorder %s189_s13, %s951_s5  ;;  %p954_p3 = scmp.lt.s32.totalorder %s952_s7, %s945_s26 }
  0x1b   : > { %p949_p1 = pneg %p948_p0 }
  0x1c   : > { %p955_p4 = por %p954_p3, %p953_p2 }
  0x1e   : > { %p956_p5 = pnand %p955_p4, %p949_p1 }
  0x20   : > { %959 = shalt.err (!%p956_p5)
}
  0x21   : > { %s1029_s28 = smov 128   ;;  %s1030_s6 = smov 64  }
  0x22   : > { %s1031_s8 = smov 4   ;;  %p205_p6 = scmp.lt.s32.totalorder %s1026_s22, 9 }
  0x23   : > { %849 = dma.hbm_to_vmem [thread:$0]  (!%p1134_p10), %s187_s23, 512, %s189_s13, %s176_s27, %s1029_s28, %s1030_s6, %s1031_s8  }
  0x24   : > { %p206_p8 = pnand %p724_p11, %p205_p6 }
  0x25   : > { %s211_s10 = sand.u32 (!%p206_p8), 1, %s1002_s16  }
  0x26   : > { %209 = sbr.rel (%p206_p8) target bundleno = 510 (0x1fe), region = 36  ;;  %s725_s11 = sshll.u32 (!%p206_p8), %s211_s10, 5 }
  0x27   : > { %s212_s12 = scalar_lea.sflag (!%p206_p8), [#allocation4], %s211_s10  ;;  %s1147_s14 = scalar_lea.vmem (!%p206_p8), [#allocation3], %s725_s11 }
  0x2b   : > { %993 = dma.done.wait (%p1114_p7), %s212_s12, 512  }
  0x2c   : > { %995 = vsyncadd (%p1114_p7), %s212_s12, 4294966784  ;;  %s726_s25 = sshll.u32 %s1010_s18, 4  ;;  %s728_s13 = sshll.u32 %s1014_s19, 3 }
  0x2d   : > { %p247_p9 = scmp.lt.s32.totalorder %s726_s25, 31  ;;  %p253_p10 = scmp.lt.s32.totalorder %s728_s13, 31 }
  0x2e   : > { %p730_p7 = scmp.ne.s32.totalorder %s1010_s18, 0 }
  0x2f   : > { %s1265_s25 = smov (!%p247_p9, %s726_s25), 31  ;;  %s1267_s13 = smov (!%p253_p10, %s728_s13), 31 }
  0x30   : > { %s727_s15 = sshll.u32 %s1265_s25, 2  ;;  %s729_s30 = sshll.u32 %s1267_s13, 2 }
  0x31   : > { %s1158_s26 = scalar_lea.vmem %s1241_s1, %s727_s15  ;;  %s1163_s29 = scalar_lea.vmem %s1244_s4, %s729_s30 }
  0x32   : > { %262 = sbr.rel (%p730_p7) target bundleno = 60 (0x3c), region = 44 }
  0x37   : > { %v731_v0 = vld [vmem:[%s1242_s2] ss:$0 sm:$0xff]  ;;  %vm270_vm0 = vcmask 261120  }
  0x38   : > { %271 = vst.msk [vmem:[#allocation2] sm:$0xff] %vm270_vm0, %v731_v0  ;;  %272 = vst.msk [vmem:[#allocation2 + $0x8] sm:$0xff] %vm270_vm0, %v731_v0 }
  0x39   : > { %273 = vst.msk [vmem:[#allocation2 + $0x10] sm:$0xff] %vm270_vm0, %v731_v0  ;;  %274 = vst.msk [vmem:[#allocation2 + $0x18] sm:$0xff] %vm270_vm0, %v731_v0 }
  0x3a   : > { %275 = vst.msk [vmem:[#allocation2 + $0x20] sm:$0xff] %vm270_vm0, %v731_v0  ;;  %276 = vst.msk [vmem:[#allocation2 + $0x28] sm:$0xff] %vm270_vm0, %v731_v0 }
  0x3b   : > { %277 = vst.msk [vmem:[#allocation2 + $0x30] sm:$0xff] %vm270_vm0, %v731_v0  ;;  %278 = vst.msk [vmem:[#allocation2 + $0x38] sm:$0xff] %vm270_vm0, %v731_v0 }
  0x3c PF: > { %v918_v1 = vld [vmem:[%s1158_s26 + $0x38] sm:$0xff]   ;;  %v919_v2 = vld [vmem:[%s1158_s26 + $0x30] sm:$0xff]   ;;  %v920_v3 = vld [vmem:[%s1158_s26 + $0x28] sm:$0xff]   ;;  %vm456_vm1 = vcmask 261120   ;;  %p744_p11 = scmp.ne.s32.totalorder %s1010_s18, 1 }
  0x3d   : > { %788 = vmatprep.subr.bf16.mxu0 %v918_v1  ;;  %824 = vmatprep.subr.bf16.mxu1 %v918_v1  ;;  %v921_v4 = vld [vmem:[%s1158_s26 + $0x20] sm:$0xff]   ;;  %v927_v6 = vld [vmem:[%s1147_s14 + $0x10] sm:$0xff]   ;;  %v922_v7 = vld [vmem:[%s1158_s26 + $0x18] sm:$0xff]  }
  0x3e   : > { %789 = vmatpush3.bf16.msra.mxu0 %v918_v1  ;;  %832 = vmatpush3.bf16.msra.mxu1 %v918_v1  ;;  %v926_v5 = vld [vmem:[%s1147_s14] sm:$0xff]   ;;  %v923_v8 = vld [vmem:[%s1158_s26 + $0x10] sm:$0xff]   ;;  %v924_v9 = vld [vmem:[%s1158_s26 + $0x8] sm:$0xff]  }
  0x3f   : > { %790 = vmatprep.subr.bf16.mxu0 %v919_v2  ;;  %825 = vmatprep.subr.bf16.mxu1 %v919_v2  ;;  %v925_v10 = vld [vmem:[%s1158_s26] sm:$0xff]   ;;  %v928_v11 = vld [vmem:[%s1147_s14 + $0x8] sm:$0xff]   ;;  %v929_v12 = vld [vmem:[%s1147_s14 + $0x18] sm:$0xff]  }
  0x40   : > { %804 = vmatprep.mubr.bf16.mxu0 %v926_v5  ;;  %808 = vmatprep.mubr.bf16.mxu1 %v927_v6  ;;  %v281_v13 = vld [vmem:[#allocation2 + $0x10] sm:$0xff]  ;;  %v279_v17 = vld [vmem:[#allocation2] sm:$0xff]  ;;  %v282_v23 = vld [vmem:[#allocation2 + $0x18] sm:$0xff] }
  0x41   : > { %v283_v18 = vld [vmem:[#allocation2 + $0x20] sm:$0xff]  ;;  %v280_v29 = vld [vmem:[#allocation2 + $0x8] sm:$0xff] }
  0x42   : > { %791 = vmatpush3.bf16.msra.mxu0 %v919_v2  ;;  %833 = vmatpush3.bf16.msra.mxu1 %v919_v2  ;;  %v285_v14 = vld [vmem:[#allocation2 + $0x30] sm:$0xff]  ;;  %v286_v24 = vld [vmem:[#allocation2 + $0x38] sm:$0xff]  ;;  %v284_v30 = vld [vmem:[#allocation2 + $0x28] sm:$0xff] }
  0x43   : > { %792 = vmatprep.subr.bf16.mxu0 %v920_v3  ;;  %826 = vmatprep.subr.bf16.mxu1 %v920_v3 }
  0x46   : > { %793 = vmatpush3.bf16.msra.mxu0 %v920_v3  ;;  %834 = vmatpush3.bf16.msra.mxu1 %v920_v3 }
  0x47   : > { %794 = vmatprep.subr.bf16.mxu0 %v921_v4  ;;  %827 = vmatprep.subr.bf16.mxu1 %v921_v4 }
  0x4a   : > { %795 = vmatpush3.bf16.msra.mxu0 %v921_v4  ;;  %835 = vmatpush3.bf16.msra.mxu1 %v921_v4 }
  0x4b   : > { %796 = vmatprep.subr.bf16.mxu0 %v922_v7  ;;  %828 = vmatprep.subr.bf16.mxu1 %v922_v7 }
  0x4e   : > { %797 = vmatpush3.bf16.msra.mxu0 %v922_v7  ;;  %836 = vmatpush3.bf16.msra.mxu1 %v922_v7 }
  0x4f   : > { %798 = vmatprep.subr.bf16.mxu0 %v923_v8  ;;  %829 = vmatprep.subr.bf16.mxu1 %v923_v8 }
  0x52   : > { %799 = vmatpush3.bf16.msra.mxu0 %v923_v8  ;;  %837 = vmatpush3.bf16.msra.mxu1 %v923_v8 }
  0x53   : > { %800 = vmatprep.subr.bf16.mxu0 %v924_v9  ;;  %830 = vmatprep.subr.bf16.mxu1 %v924_v9 }
  0x56   : > { %801 = vmatpush3.bf16.msra.mxu0 %v924_v9  ;;  %838 = vmatpush3.bf16.msra.mxu1 %v924_v9 }
  0x57   : > { %802 = vmatprep.subr.bf16.mxu0 %v925_v10  ;;  %831 = vmatprep.subr.bf16.mxu1 %v925_v10 }
  0x5a   : > { %803 = vmatpush3.bf16.msra.mxu0 %v925_v10  ;;  %839 = vmatpush3.bf16.msra.mxu1 %v925_v10 }
  0x5d   : > { %805 = vmatmul.mubr.bf16.vlgmr.msra.gmra.mxu0 %v928_v11  ;;  %809 = vmatmul.mubr.bf16.vlgmr.msra.gmra.mxu1 %v929_v12 }
 0x11d   : > { %v806_v15 = vpop.f32.mrf.mxu0  ;;  %v810_v16 = vpop.f32.mrf.mxu1 }
 0x11e   : > { %v450_v19 = vadd.f32 %v806_v15, %v281_v13  ;;  %v454_v20 = vadd.f32 %v810_v16, %v285_v14 }
 0x11f   : > { %v417_v21 = vpop.f32.mrf.mxu0  ;;  %v433_v22 = vpop.f32.mrf.mxu1 }
 0x120   : > { %459 = vst.msk [vmem:[#allocation2 + $0x10] sm:$0xff] %vm456_vm1, %v450_v19  ;;  %463 = vst.msk [vmem:[#allocation2 + $0x30] sm:$0xff] %vm456_vm1, %v454_v20  ;;  %v448_v25 = vadd.f32 %v417_v21, %v279_v17  ;;  %v452_v26 = vadd.f32 %v433_v22, %v283_v18 }
 0x121   : > { %v807_v27 = vpop.f32.mrf.mxu0  ;;  %v811_v28 = vpop.f32.mrf.mxu1 }
 0x122   : > { %457 = vst.msk [vmem:[#allocation2] sm:$0xff] %vm456_vm1, %v448_v25  ;;  %461 = vst.msk [vmem:[#allocation2 + $0x20] sm:$0xff] %vm456_vm1, %v452_v26  ;;  %v451_v31 = vadd.f32 %v807_v27, %v282_v23  ;;  %v455_v32 = vadd.f32 %v811_v28, %v286_v24  ;;  %468 = sbr.rel (%p744_p11) target bundleno = 510 (0x1fe), region = 48 }
 0x123   : > { %v420_v33 = vpop.f32.mrf.mxu0  ;;  %v436_v34 = vpop.f32.mrf.mxu1 }
 0x124   : > { %460 = vst.msk [vmem:[#allocation2 + $0x18] sm:$0xff] %vm456_vm1, %v451_v31  ;;  %464 = vst.msk [vmem:[#allocation2 + $0x38] sm:$0xff] %vm456_vm1, %v455_v32  ;;  %v449_v35 = vadd.f32 %v420_v33, %v280_v29  ;;  %v453_v36 = vadd.f32 %v436_v34, %v284_v30 }
 0x126   : > { %458 = vst.msk [vmem:[#allocation2 + $0x8] sm:$0xff] %vm456_vm1, %v449_v35  ;;  %462 = vst.msk [vmem:[#allocation2 + $0x28] sm:$0xff] %vm456_vm1, %v453_v36 }
 0x127   : > { %v930_v37 = vld [vmem:[%s1243_s3 + $0x8] sm:$0xff]   ;;  %v931_v38 = vld [vmem:[%s1243_s3] sm:$0xff]   ;;  %v471_v46 = vld [vmem:[#allocation2 + $0x10] sm:$0xff]  ;;  %vm614_vm2 = vcmask 257024  }
 0x128   : > { %812 = vmatprep.subr.bf16.mxu0 %v930_v37  ;;  %840 = vmatprep.subr.bf16.mxu1 %v930_v37  ;;  %v479_v49 = vmax.f32 %v471_v46, 0.0  ;;  %v475_v51 = vld [vmem:[#allocation2 + $0x30] sm:$0xff] }
 0x129   : > { %v469_v39 = vld [vmem:[#allocation2] sm:$0xff]  ;;  %813 = vmatpush3.bf16.msra.mxu0 %v930_v37  ;;  %842 = vmatpush3.bf16.msra.mxu1 %v930_v37  ;;  %v483_v54 = vmax.f32 %v475_v51, 0.0 }
 0x12a   : > { %v473_v41 = vld [vmem:[#allocation2 + $0x20] sm:$0xff]  ;;  %v477_v42 = vmax.f32 %v469_v39, 0.0  ;;  %814 = vmatprep.subr.bf16.mxu0 %v931_v38  ;;  %841 = vmatprep.subr.bf16.mxu1 %v931_v38 }
 0x12b   : > { %v481_v45 = vmax.f32 %v473_v41, 0.0  ;;  %v472_v47 = vld [vmem:[#allocation2 + $0x18] sm:$0xff] }
 0x12c   : > { %v480_v50 = vmax.f32 %v472_v47, 0.0  ;;  %v476_v52 = vld [vmem:[#allocation2 + $0x38] sm:$0xff] }
 0x12d   : > { %v470_v40 = vld [vmem:[#allocation2 + $0x8] sm:$0xff]  ;;  %v484_v55 = vmax.f32 %v476_v52, 0.0  ;;  %815 = vmatpush3.bf16.msra.mxu0 %v931_v38  ;;  %843 = vmatpush3.bf16.msra.mxu1 %v931_v38 }
 0x12e   : > { %v478_v43 = vmax.f32 %v470_v40, 0.0  ;;  %v474_v44 = vld [vmem:[#allocation2 + $0x28] sm:$0xff]  ;;  %v486_v57 = vpack.c.bf16 %v480_v50, %v479_v49 }
 0x12f   : > { %v482_v48 = vmax.f32 %v474_v44, 0.0  ;;  %v488_v58 = vpack.c.bf16 %v484_v55, %v483_v54 }
 0x130   : > { %v485_v53 = vpack.c.bf16 %v478_v43, %v477_v42 }
 0x131   : > { %v487_v56 = vpack.c.bf16 %v482_v48, %v481_v45 }
 0x132   : > { %816 = vmatprep.mubr.msk.bf16.mxu0 %vm456_vm1, %v485_v53 }
 0x133   : > { %820 = vmatprep.mubr.msk.bf16.mxu1 %vm456_vm1, %v487_v56  ;;  %817 = vmatmul.mubr.msk.bf16.vlgmr.msra.gmra.mxu0 %vm456_vm1, %v486_v57 }
 0x134   : > { %821 = vmatmul.mubr.msk.bf16.vlgmr.msra.gmra.mxu1 %vm456_vm1, %v488_v58 }
 0x1f3   : > { %v818_v59 = vpop.f32.mrf.mxu0 }
 0x1f4   : > { %v822_v60 = vpop.f32.mrf.mxu1  ;;  %v764_v61 = vpack.c.bf16 %v818_v59, %v818_v59 }
 0x1f5   : > { %v768_v62 = vpack.c.bf16 %v822_v60, %v822_v60  ;;  %v551_v63 = vpop.f32.mrf.mxu0 }
 0x1f6   : > { %v567_v0 = vpop.f32.mrf.mxu1  ;;  %617 = vst.msk [vmem:[%s1163_s29 + $0x8] sm:$0xf] %vm614_vm2, %v764_v61  ;;  %v762_v1 = vpack.c.bf16 %v551_v63, %v551_v63 }
 0x1f7   : > { %621 = vst.msk [vmem:[%s1163_s29 + $0x18] sm:$0xf] %vm614_vm2, %v768_v62  ;;  %v766_v2 = vpack.c.bf16 %v567_v0, %v567_v0  ;;  %v819_v3 = vpop.f32.mrf.mxu0 }
 0x1f8   : > { %v823_v4 = vpop.f32.mrf.mxu1  ;;  %615 = vst.msk [vmem:[%s1163_s29] sm:$0xf] %vm614_vm2, %v762_v1  ;;  %v765_v5 = vpack.c.bf16 %v819_v3, %v819_v3 }
 0x1f9   : > { %619 = vst.msk [vmem:[%s1163_s29 + $0x10] sm:$0xf] %vm614_vm2, %v766_v2  ;;  %v769_v6 = vpack.c.bf16 %v823_v4, %v823_v4  ;;  %v554_v7 = vpop.f32.mrf.mxu0 }
 0x1fa   : > { %v570_v8 = vpop.f32.mrf.mxu1  ;;  %618 = vst.msk [vmem:[%s1163_s29 + $0xc] sm:$0xf] %vm614_vm2, %v765_v5  ;;  %v763_v9 = vpack.c.bf16 %v554_v7, %v554_v7 }
 0x1fb   : > { %622 = vst.msk [vmem:[%s1163_s29 + $0x1c] sm:$0xf] %vm614_vm2, %v769_v6  ;;  %v767_v10 = vpack.c.bf16 %v570_v8, %v570_v8 }
 0x1fc   : > { %616 = vst.msk [vmem:[%s1163_s29 + $0x4] sm:$0xf] %vm614_vm2, %v763_v9 }
 0x1fd   : > { %620 = vst.msk [vmem:[%s1163_s29 + $0x14] sm:$0xf] %vm614_vm2, %v767_v10 }
 0x1fe PF: > { %s17_s22 = sadd.s32 1, %s1026_s22   ;;  %s1250_s12 = sld [smem:[#allocation6_spill]] }
 0x1ff   : > { %p14_p12 = scmp.ge.s32.totalorder %s17_s22, 10   ;;  %s1251_s15 = smov %s1002_s16 }
 0x200   : > { %s1252_s16 = smov %s1006_s17  ;;  %s1253_s17 = smov %s1124_s9 }
 0x201   : > { %s1254_s18 = smov %s1018_s20  ;;  %s1255_s19 = smov %s1022_s21 }
 0x202   : > { %s1256_s20 = smov %s1259_s24  ;;  %16 = sbr.rel (!%p14_p12) target bundleno = 5 (0x5), region = 87 }
 0x204   : > { %s1257_s21 = smov %s1250_s12 }
 0x207   :  { %645 = vsyncpa [#allocation4], 1 }
 0x208   :  { %647 = vsyncpa [#allocation4 + $0x1], 1 }

</bundles_post_ra>
